<compile_context>
chip_gen: v5e
topology: v5e:2x2
jax: 0.10.0
libtpu: 0.0.40
codegen_flags: <defaults>
</compile_context>

<pallas_src>
import functools

import numpy as np
import jax
import jax.numpy as jnp
from jax.experimental import pallas as pl
from jax.experimental.pallas import tpu as pltpu


def tilt_loss_kernel(x_ref, basis_ref, out_ref, *, tm, fb):
    """One (row-tile, frequency-block) grid step.

    x_ref     : (2*TM, n_fft)  packed [pred rows ; target rows] frame tile
    basis_ref : (n_fft, 2*FB)  [cos | sin] rDFT columns for this frequency block,
                               Hann window and 1/sqrt(n_fft) folded in (zero padding cols)
    out_ref   : (8, FB)        lane-dense partial row-sum of |mag_p - mag_t|
    """
    y = jnp.dot(x_ref[...], basis_ref[...], preferred_element_type=jnp.float32)  # (2*TM, 2*FB)

    re_p, im_p = y[0:tm, 0:fb], y[0:tm, fb:2 * fb]
    re_t, im_t = y[tm:2 * tm, 0:fb], y[tm:2 * tm, fb:2 * fb]
    mag_p = jnp.maximum(jnp.sqrt(re_p * re_p + im_p * im_p), 1e-7)
    mag_t = jnp.maximum(jnp.sqrt(re_t * re_t + im_t * im_t), 1e-7)
    part = jnp.abs(mag_p - mag_t)                                    # (TM, FB)

    # Log-depth tree over sublane groups (tm == 8 * 2^k, so every slice stays 8-row
    # aligned): exposes ILP to the 4 VALU slots instead of a serial dependence chain.
    size = tm
    while size > 8:
        half = size // 2
        part = part[0:half, :] + part[half:size, :]
        size = half
    out_ref[...] = part


def _hann_window(win_length):
    # torch.hann_window(win_length), periodic=True
    n = np.arange(win_length, dtype=np.float64)
    return 0.5 - 0.5 * np.cos(2.0 * np.pi * n / win_length)


def _frame_signal(wave, n_fft, hop):
    # torch.stft(center=True, pad_mode='reflect') framing — wrapper glue, not the hot path.
    # TODO(synk): stream the reflect-padded waveform (memory_space=pl.ANY) and build the
    # overlapping frames inside the kernel with hop-strided pl.ds reads to cut HBM traffic
    # by ~n_fft/hop for bandwidth-bound configs.
    B, L = wave.shape
    pad = n_fft // 2
    padded = jnp.pad(wave, ((0, 0), (pad, pad)), mode="reflect")
    n_frames = 1 + (L + 2 * pad - n_fft) // hop
    idx = hop * jnp.arange(n_frames)[:, None] + jnp.arange(n_fft)[None, :]
    frames = padded[:, idx]                                          # (B, n_frames, n_fft)
    return frames.reshape(B * n_frames, n_fft), n_frames


def _reweight_mask(n_freq, strategy, left_clamp_length, right_clamp_length):
    if strategy == "none":
        return np.ones((n_freq,), np.float32)
    m_len = n_freq - left_clamp_length - right_clamp_length
    mask = np.concatenate([
        np.zeros((left_clamp_length,), np.float64),
        np.linspace(0.0, 1.0, m_len),
        np.ones((right_clamp_length,), np.float64),
    ])
    if strategy == "quadratic":
        mask = mask ** 2
    elif strategy != "linear":
        raise NotImplementedError(strategy)
    return mask.astype(np.float32)


def tilt_loss(pred, target, *, fft_size, hop_length, win_length,
              reweight_strategy="linear", left_clamp_length=0, right_clamp_length=0,
              use_bf16=True):
    B, L = pred.shape
    n_freq = fft_size // 2 + 1

    # ---- host-side constants -------------------------------------------------------
    # Hann window centered into n_fft (matches torch.stft for win_length < n_fft); fold
    # window * 1/sqrt(n_fft) (normalized=True) into the rDFT basis.
    w = _hann_window(win_length)
    lpad = (fft_size - win_length) // 2
    w = np.pad(w, (lpad, fft_size - win_length - lpad))
    scale = w / np.sqrt(float(fft_size))                             # (n_fft,)

    # Drop the Nyquist bin from the matmul when it would otherwise cost an entire
    # 128-lane block per half (fft_size multiple of 256); it is handled analytically.
    drop_nyq = (fft_size % 2 == 0) and (n_freq > 1) and ((n_freq - 1) % 128 == 0)
    n_k = n_freq - 1 if drop_nyq else n_freq
    f_pad = ((n_k + 127) // 128) * 128

    # Frequency-block size (2nd grid axis): bounds basis + intermediate VMEM independent
    # of fft_size so TM stays large (v7x has only 64 MiB VMEM per TC).
    fb = f_pad
    if f_pad > 512:
        for cand in (512, 256, 128):
            if f_pad % cand == 0:
                fb = cand
                break
    num_fb = f_pad // fb

    n = np.arange(fft_size, dtype=np.float64)[:, None]
    k = np.arange(n_k, dtype=np.float64)[None, :]
    ang = 2.0 * np.pi * n * k / fft_size
    cosb = np.zeros((fft_size, f_pad), np.float64)
    sinb = np.zeros((fft_size, f_pad), np.float64)
    cosb[:, :n_k] = np.cos(ang) * scale[:, None]
    sinb[:, :n_k] = np.sin(ang) * scale[:, None]
    basis = np.zeros((fft_size, num_fb * 2 * fb), np.float32)        # [cos_j | sin_j] per block
    for j in range(num_fb):
        basis[:, j * 2 * fb: j * 2 * fb + fb] = cosb[:, j * fb:(j + 1) * fb]
        basis[:, j * 2 * fb + fb: (j + 1) * 2 * fb] = sinb[:, j * fb:(j + 1) * fb]

    mask = _reweight_mask(n_freq, reweight_strategy, left_clamp_length, right_clamp_length)

    # ---- framing (wrapper glue) ----------------------------------------------------
    fp32, n_frames = _frame_signal(pred.astype(jnp.float32), fft_size, hop_length)
    ft32, _ = _frame_signal(target.astype(jnp.float32), fft_size, hop_length)
    n_rows = B * n_frames

    in_dtype = jnp.bfloat16 if use_bf16 else jnp.float32             # bf16 default: ~3x MXU + half the DMA
    itemsize = 2 if use_bf16 else 4

    # ---- VMEM-aware tiling (generation-aware budget, intermediates counted) ---------
    try:
        vmem_cap = int(pltpu.get_tpu_info().vmem_capacity_bytes)
    except Exception:
        vmem_cap = 64 << 20                                          # conservative (v7x) fallback
    budget = min(int(0.55 * vmem_cap), 56 << 20)

    single_buf_basis = (num_fb == 1)                                  # constant index_map -> 1 buffer
    basis_bufs = 1 if single_buf_basis else 2
    basis_bytes = basis_bufs * fft_size * 2 * fb * itemsize

    def vmem_est(tm_):
        frames_bytes = 2 * (2 * tm_) * fft_size * itemsize            # packed LHS, double-buffered
        out_bytes = 2 * 8 * fb * 4
        inter_bytes = (2 * tm_) * (2 * fb) * 4 + 6 * tm_ * fb * 4     # y + mag/diff f32 temps
        return frames_bytes + basis_bytes + out_bytes + inter_bytes + (1 << 20)

    tm = 8
    for cand in (1024, 512, 256, 128, 64, 32, 16, 8):                 # tm = 8 * 2^k (for tree reduce)
        if vmem_est(cand) <= budget:
            tm = cand
            break
    rows_up8 = ((n_rows + 7) // 8) * 8
    while tm > 8 and tm >= 2 * rows_up8:                              # don't over-tile tiny inputs
        tm //= 2
    if num_fb == 1:                                                   # keep >= 2 grid steps for megacore
        while tm > 8 and (n_rows + tm - 1) // tm < 2:
            tm //= 2

    num_tiles = (n_rows + tm - 1) // tm
    n_pad = num_tiles * tm

    fp = jnp.pad(fp32, ((0, n_pad - n_rows), (0, 0))).astype(in_dtype)
    ft = jnp.pad(ft32, ((0, n_pad - n_rows), (0, 0))).astype(in_dtype)
    packed = jnp.concatenate(
        [fp.reshape(num_tiles, tm, fft_size), ft.reshape(num_tiles, tm, fft_size)],
        axis=1).reshape(num_tiles * 2 * tm, fft_size)                 # per-tile [pred ; target]
    basis_dev = jnp.asarray(basis, dtype=in_dtype)

    vmem_limit = int(min(max(int(1.35 * vmem_est(tm)), 16 << 20), 56 << 20,
                         int(0.875 * vmem_cap)))

    kernel = functools.partial(tilt_loss_kernel, tm=tm, fb=fb)

    def run(single_buffer):
        basis_kwargs = dict(pipeline_mode=pl.Buffered(1)) if single_buffer else {}
        return pl.pallas_call(
            kernel,
            out_shape=jax.ShapeDtypeStruct((num_tiles * 8, f_pad), jnp.float32),
            grid=(num_tiles, num_fb),
            in_specs=[
                pl.BlockSpec((2 * tm, fft_size), lambda i, j: (i, 0)),        # packed frames
                pl.BlockSpec((fft_size, 2 * fb), lambda i, j: (0, j), **basis_kwargs),
            ],
            out_specs=pl.BlockSpec((8, fb), lambda i, j: (i, j)),
            compiler_params=pltpu.CompilerParams(
                dimension_semantics=("parallel", "arbitrary"),
                vmem_limit_bytes=vmem_limit),
        )(packed, basis_dev)

    if single_buf_basis:
        try:
            partials = run(True)
        except Exception:                                             # pipeline_mode unsupported
            partials = run(False)
    else:
        partials = run(False)

    # ---- tiny epilogue (mask applied once per frequency, not per row) ---------------
    col = jnp.sum(partials, axis=0)[:n_k]                             # (n_k,)
    total = jnp.sum(col * jnp.asarray(mask[:n_k]))

    if drop_nyq:
        # Nyquist bin handled analytically: X[N/2] = sum_n x[n] * w[n] * (-1)^n / sqrt(N)
        nyq = (scale * np.where(np.arange(fft_size) % 2 == 0, 1.0, -1.0)).astype(np.float32)
        p_ny = jnp.maximum(jnp.abs(fp32 @ jnp.asarray(nyq)), 1e-7)
        t_ny = jnp.maximum(jnp.abs(ft32 @ jnp.asarray(nyq)), 1e-7)
        total = total + jnp.sum(jnp.abs(p_ny - t_ny)) * jnp.float32(mask[n_freq - 1])

    # diff.mean() over (B, n_freq, n_frames); padded rows / frequency columns contribute 0.
    return total / jnp.float32(B * n_freq * n_frames)


# TODO(synk): frequency_scale='mel' (torchaudio melscale_fbanks) and the 'spectral'
# reweight strategy (scipy Butterworth lfilter over a log-mel spectrum) are not
# translated; this kernel implements the 'linear' frequency scale with the
# 'linear'/'quadratic'/'none' reweight strategies.

if __name__ == "__main__":
    key = jax.random.PRNGKey(0)
    kp, kt = jax.random.split(key)
    B, L = 2, 256
    fft_size, hop_length, win_length = 128, 32, 128

    pred = jax.random.normal(kp, (B, L), dtype=jnp.float32)
    target = jax.random.normal(kt, (B, L), dtype=jnp.float32)

    loss = tilt_loss(pred, target,
                     fft_size=fft_size, hop_length=hop_length, win_length=win_length)
    jax.block_until_ready(loss)
    print("KERNEL_OK")
</pallas_src>

<mosaic_0001>
module attributes {stable_mosaic.version = 11 : i64} {
  func.func @tilt_loss_kernel(%arg0: i32, %arg1: i32, %arg2: memref<32x128xbf16, #tpu.memory_space<vmem>>, %arg3: memref<128x256xbf16, #tpu.memory_space<vmem>>, %arg4: memref<8x128xf32, #tpu.memory_space<vmem>>) attributes {dimension_semantics = [#tpu.dimension_semantics<parallel>, #tpu.dimension_semantics<arbitrary>], iteration_bounds = array<i64: 2, 1>, scalar_prefetch = 0 : i64, scratch_operands = 0 : i64, tpu.core_type = #tpu.core_type<tc>, window_params = [{transform_indices = @transform_0, window_bounds = array<i64: 32, 128>}, {pipeline_mode = #tpu.pipeline_mode<synchronous>, transform_indices = @transform_1, window_bounds = array<i64: 128, 256>}, {transform_indices = @transform_2, window_bounds = array<i64: 8, 128>}]} {
    %c0 = arith.constant 0 : index
    %c0_0 = arith.constant 0 : index
    %0 = vector.load %arg2[%c0, %c0_0] : memref<32x128xbf16, #tpu.memory_space<vmem>>, vector<32x128xbf16>
    %c0_1 = arith.constant 0 : index
    %c0_2 = arith.constant 0 : index
    %1 = vector.load %arg3[%c0_1, %c0_2] : memref<128x256xbf16, #tpu.memory_space<vmem>>, vector<128x256xbf16>
    %cst = arith.constant dense<0.000000e+00> : vector<32x256xf32>
    %2 = tpu.matmul %0, %1, %cst {dimension_numbers = #tpu.dot_dimension_numbers<[1], [0], [0], [1], [0, 0, 1, 1], [], []>} : vector<32x128xbf16>, vector<128x256xbf16>, vector<32x256xf32> -> vector<32x256xf32>
    %3 = vector.extract_strided_slice %2 {offsets = [0, 0], sizes = [16, 128], strides = [1, 1]} : vector<32x256xf32> to vector<16x128xf32>
    %4 = vector.extract_strided_slice %2 {offsets = [0, 128], sizes = [16, 128], strides = [1, 1]} : vector<32x256xf32> to vector<16x128xf32>
    %5 = vector.extract_strided_slice %2 {offsets = [16, 0], sizes = [16, 128], strides = [1, 1]} : vector<32x256xf32> to vector<16x128xf32>
    %6 = vector.extract_strided_slice %2 {offsets = [16, 128], sizes = [16, 128], strides = [1, 1]} : vector<32x256xf32> to vector<16x128xf32>
    %7 = arith.mulf %3, %3 : vector<16x128xf32>
    %8 = arith.mulf %4, %4 : vector<16x128xf32>
    %9 = arith.addf %7, %8 : vector<16x128xf32>
    %10 = math.sqrt %9 : vector<16x128xf32>
    %cst_3 = arith.constant 1.000000e-07 : f32
    %11 = vector.broadcast %cst_3 : f32 to vector<16x128xf32>
    %12 = arith.maximumf %10, %11 : vector<16x128xf32>
    %13 = arith.mulf %5, %5 : vector<16x128xf32>
    %14 = arith.mulf %6, %6 : vector<16x128xf32>
    %15 = arith.addf %13, %14 : vector<16x128xf32>
    %16 = math.sqrt %15 : vector<16x128xf32>
    %cst_4 = arith.constant 1.000000e-07 : f32
    %17 = vector.broadcast %cst_4 : f32 to vector<16x128xf32>
    %18 = arith.maximumf %16, %17 : vector<16x128xf32>
    %19 = arith.subf %12, %18 : vector<16x128xf32>
    %20 = math.absf %19 : vector<16x128xf32>
    %21 = vector.extract_strided_slice %20 {offsets = [0, 0], sizes = [8, 128], strides = [1, 1]} : vector<16x128xf32> to vector<8x128xf32>
    %22 = vector.extract_strided_slice %20 {offsets = [8, 0], sizes = [8, 128], strides = [1, 1]} : vector<16x128xf32> to vector<8x128xf32>
    %23 = arith.addf %21, %22 : vector<8x128xf32>
    %c0_5 = arith.constant 0 : index
    %c0_6 = arith.constant 0 : index
    %24 = vector.load %arg4[%c0_5, %c0_6] : memref<8x128xf32, #tpu.memory_space<vmem>>, vector<8x128xf32>
    tpu.vector_store %arg4[%c0_5, %c0_6], %23 {strides = array<i32>} : memref<8x128xf32, #tpu.memory_space<vmem>>, vector<8x128xf32>,
    return
  }
  func.func @transform_0(%arg0: i32, %arg1: i32) -> (i32, i32) {
    %c0_i32 = arith.constant 0 : i32
    %c0_i32_0 = arith.constant 0 : i32
    return %arg0, %c0_i32 : i32, i32
  }
  func.func @transform_1(%arg0: i32, %arg1: i32) -> (i32, i32) {
    %c0_i32 = arith.constant 0 : i32
    %c0_i32_0 = arith.constant 0 : i32
    return %c0_i32, %arg1 : i32, i32
  }
  func.func @transform_2(%arg0: i32, %arg1: i32) -> (i32, i32) {
    %c0_i32 = arith.constant 0 : i32
    return %arg0, %arg1 : i32, i32
  }
}

module attributes {stable_mosaic.version = 11 : i64} {
  func.func @tilt_loss_kernel(%arg0: i32, %arg1: i32, %arg2: memref<32x128xbf16, #tpu.memory_space<vmem>>, %arg3: memref<128x256xbf16, #tpu.memory_space<vmem>>, %arg4: memref<8x128xf32, #tpu.memory_space<vmem>>) attributes {dimension_semantics = [#tpu.dimension_semantics<parallel>, #tpu.dimension_semantics<arbitrary>], iteration_bounds = array<i64: 2, 1>, scalar_prefetch = 0 : i64, scratch_operands = 0 : i64, tpu.core_type = #tpu.core_type<tc>, window_params = [{transform_indices = @transform_0, window_bounds = array<i64: 32, 128>}, {transform_indices = @transform_1, window_bounds = array<i64: 128, 256>}, {transform_indices = @transform_2, window_bounds = array<i64: 8, 128>}]} {
    %c0 = arith.constant 0 : index
    %c0_0 = arith.constant 0 : index
    %0 = vector.load %arg2[%c0, %c0_0] : memref<32x128xbf16, #tpu.memory_space<vmem>>, vector<32x128xbf16>
    %c0_1 = arith.constant 0 : index
    %c0_2 = arith.constant 0 : index
    %1 = vector.load %arg3[%c0_1, %c0_2] : memref<128x256xbf16, #tpu.memory_space<vmem>>, vector<128x256xbf16>
    %cst = arith.constant dense<0.000000e+00> : vector<32x256xf32>
    %2 = tpu.matmul %0, %1, %cst {dimension_numbers = #tpu.dot_dimension_numbers<[1], [0], [0], [1], [0, 0, 1, 1], [], []>} : vector<32x128xbf16>, vector<128x256xbf16>, vector<32x256xf32> -> vector<32x256xf32>
    %3 = vector.extract_strided_slice %2 {offsets = [0, 0], sizes = [16, 128], strides = [1, 1]} : vector<32x256xf32> to vector<16x128xf32>
    %4 = vector.extract_strided_slice %2 {offsets = [0, 128], sizes = [16, 128], strides = [1, 1]} : vector<32x256xf32> to vector<16x128xf32>
    %5 = vector.extract_strided_slice %2 {offsets = [16, 0], sizes = [16, 128], strides = [1, 1]} : vector<32x256xf32> to vector<16x128xf32>
    %6 = vector.extract_strided_slice %2 {offsets = [16, 128], sizes = [16, 128], strides = [1, 1]} : vector<32x256xf32> to vector<16x128xf32>
    %7 = arith.mulf %3, %3 : vector<16x128xf32>
    %8 = arith.mulf %4, %4 : vector<16x128xf32>
    %9 = arith.addf %7, %8 : vector<16x128xf32>
    %10 = math.sqrt %9 : vector<16x128xf32>
    %cst_3 = arith.constant 1.000000e-07 : f32
    %11 = vector.broadcast %cst_3 : f32 to vector<16x128xf32>
    %12 = arith.maximumf %10, %11 : vector<16x128xf32>
    %13 = arith.mulf %5, %5 : vector<16x128xf32>
    %14 = arith.mulf %6, %6 : vector<16x128xf32>
    %15 = arith.addf %13, %14 : vector<16x128xf32>
    %16 = math.sqrt %15 : vector<16x128xf32>
    %cst_4 = arith.constant 1.000000e-07 : f32
    %17 = vector.broadcast %cst_4 : f32 to vector<16x128xf32>
    %18 = arith.maximumf %16, %17 : vector<16x128xf32>
    %19 = arith.subf %12, %18 : vector<16x128xf32>
    %20 = math.absf %19 : vector<16x128xf32>
    %21 = vector.extract_strided_slice %20 {offsets = [0, 0], sizes = [8, 128], strides = [1, 1]} : vector<16x128xf32> to vector<8x128xf32>
    %22 = vector.extract_strided_slice %20 {offsets = [8, 0], sizes = [8, 128], strides = [1, 1]} : vector<16x128xf32> to vector<8x128xf32>
    %23 = arith.addf %21, %22 : vector<8x128xf32>
    %c0_5 = arith.constant 0 : index
    %c0_6 = arith.constant 0 : index
    %24 = vector.load %arg4[%c0_5, %c0_6] : memref<8x128xf32, #tpu.memory_space<vmem>>, vector<8x128xf32>
    tpu.vector_store %arg4[%c0_5, %c0_6], %23 {strides = array<i32>} : memref<8x128xf32, #tpu.memory_space<vmem>>, vector<8x128xf32>,
    return
  }
  func.func @transform_0(%arg0: i32, %arg1: i32) -> (i32, i32) {
    %c0_i32 = arith.constant 0 : i32
    %c0_i32_0 = arith.constant 0 : i32
    return %arg0, %c0_i32 : i32, i32
  }
  func.func @transform_1(%arg0: i32, %arg1: i32) -> (i32, i32) {
    %c0_i32 = arith.constant 0 : i32
    %c0_i32_0 = arith.constant 0 : i32
    return %c0_i32, %arg1 : i32, i32
  }
  func.func @transform_2(%arg0: i32, %arg1: i32) -> (i32, i32) {
    %c0_i32 = arith.constant 0 : i32
    return %arg0, %arg1 : i32, i32
  }
}

</mosaic_0001>

<bundles_post_ra>
// kernel: tpu_custom_call.1
= control target key start
LH: loop header
LB: loop body
LE: loop exit
PB: predicated region body
PF: predicated region fallthrough
CT: control target
= control target key end

     0   :  { %7 = vsyncpa [#allocation3], 0  ;;  %s1063_s0 = inlined_call_operand.hbm [shape: bf16[64,128], index: 0, kind: input, shape index: {}]   ;;  %s1064_s1 = inlined_call_operand.hbm [shape: bf16[128,256], index: 1, kind: input, shape index: {}]   ;;  %s1065_s2 = inlined_call_operand.hbm [shape: f32[16,128], index: 2, kind: output, shape index: {}]  }
   0x1   :  { %9 = vsyncpa [#allocation3 + $0x1], 0 }
   0x2   :  { %10 = vsyncpa [#allocation6], 0 }
   0x3   :  { %11 = vsyncpa [#allocation4], 0 }
   0x4   :  { %13 = vsyncpa [#allocation4 + $0x1], 0  ;;  %s909_s9 = smov 0   ;;  %s911_s10 = smov 0  }
   0x5   :  { %s913_s11 = smov 0   ;;  %s915_s12 = smov 0  }
   0x6   :  { %s917_s13 = smov 0   ;;  %s919_s14 = smov 0  }
   0x7 LB: > { %s533_s15 = sadd.s32 4294967295, %s887_s14   ;;  %s534_s16 = sadd.s32 4294967294, %s887_s14   ;;  %s887_s14 = sphi %s919_s14, %s19_s14   ;;  %s883_s13 = sphi %s917_s13, %s1077_s13   ;;  %s879_s12 = sphi %s915_s12, %s1076_s12   ;;  %s875_s11 = sphi %s913_s11, %s1075_s11   ;;  %s871_s10 = sphi %s911_s10, %s1074_s10   ;;  %s867_s9 = sphi %s909_s9, %s1073_s9  }
   0x8   : > { %p51_p0 = scmp.ne.s32.totalorder %s871_s10, %s867_s9  ;;  %p943_p1 = scmp.eq.s32.totalorder %s533_s15, 0 }
   0x9   : > { %p947_p2 = scmp.eq.s32.totalorder %s533_s15, 1  ;;  %p109_p3 = scmp.eq.s32.totalorder %s534_s16, 1 }
   0xa   : > { %p953_p4 = por %p943_p1, %p51_p0  ;;  %p535_p5 = scmp.ge.s32.totalorder %s887_s14, 1 }
   0xb   : > { %p958_p6 = por %p109_p3, %p51_p0  ;;  %p116_p7 = scmp.lt.s32.totalorder %s887_s14, 3 }
   0xc   : > { %s130_s23 = sshll.u32 %s1064_s1, 4  ;;  %s889_s25 = smov [#allocation5]   ;;  %s131_s23 = int_to_ptr.hbm [resolvable:$true] %s130_s23 }
   0xd   : > { %p966_p8 = pnand %p535_p5, %p116_p7  ;;  %s132_s26 = sshll.u32 %s889_s25, 4  ;;  %s133_s26 = int_to_ptr.vmem [resolvable:$true] %s132_s26 }
   0xe   : > { %p537_p11 = scmp.ge.s32.totalorder %s887_s14, 2  ;;  %s890_s27 = smov 128  }
   0xf   : > { %p664_p9 = pneg %p966_p8  ;;  %s891_s28 = smov 8  }
  0x10   : > { %s31_s29 = sadd.s32 1, %s883_s13  ;;  %s38_s30 = sadd.s32 1, %s875_s11 }
  0x11   : > { %p665_p10 = pnand %p664_p9, %p943_p1  ;;  %p33_p12 = scmp.ge.s32.totalorder %s31_s29, 2 }
  0x12   : > { %p45_p13 = scmp.ne.s32.totalorder %s875_s11, %s871_s10  ;;  %p46_p0 = scmp.eq.s32.totalorder %s887_s14, 0 }
  0x13   : > { %667 = dma.hbm_to_vmem [thread:$0]  (!%p665_p10), %s131_s23, 2048, %s133_s26, [#allocation6], %s890_s27, %s890_s27, %s891_s28  }
  0x14   : > { %s1079_s29 = smov (%p33_p12, %s31_s29), 0  ;;  %p982_p3 = por %p46_p0, %p45_p13 }
  0x15   : > { %p988_p5 = por %p947_p2, %p45_p13  ;;  %s35_s5 = ssub.s32 %s883_s13, %s1079_s29 }
  0x16   : > { %p677_p7 = scmp.lt.s32.totalorder %s887_s14, 2  ;;  %p36_p9 = scmp.eq.s32.totalorder %s35_s5, 0 }
  0x17   : > { %s146_s6 = sand.u32 1, %s875_s11   ;;  %s621_s15 = sshll.u32 %s883_s13, 4 }
  0x18   : > { %s538_s7 = sshll.u32 %s146_s6, 4  ;;  %s155_s22 = scalar_lea.hbm %s1063_s0, %s621_s15 }
  0x19   : > { %s997_s8 = scalar_select %p36_p9, %s875_s11, %s38_s30  }
  0x1a   : > { %s150_s23 = scalar_lea.vmem [#allocation2], %s538_s7  ;;  %s156_s18 = sshll.u32 %s155_s22, 4  ;;  %s157_s18 = int_to_ptr.hbm [resolvable:$true] %s156_s18 }
  0x1b   : > { %s158_s25 = sshll.u32 %s150_s23, 4  ;;  %p669_p2 = pnand %p677_p7, %p982_p3  ;;  %s159_s25 = int_to_ptr.vmem [resolvable:$true] %s158_s25 }
  0x1c   : > { %s147_s26 = scalar_lea.sflag [#allocation3], %s146_s6  ;;  %s892_s27 = smov 64  }
  0x1d   : > { %s893_s28 = smov 4   ;;  %170 = sbr.rel (%p966_p8) target bundleno = 248 (0xf8), region = 28 }
  0x1e   : > { %671 = dma.hbm_to_vmem [thread:$0]  (!%p669_p2), %s157_s18, 256, %s159_s25, %s147_s26, %s892_s27, %s892_s27, %s893_s28  }
  0x1f   : > { %s1008_s30 = sand.u32 (!%p966_p8), 1, %s871_s10  }
  0x20   : > { %s542_s5 = sshll.u32 (!%p966_p8), %s1008_s30, 4  ;;  %s173_s7 = scalar_lea.sflag (!%p966_p8), [#allocation3], %s1008_s30 }
  0x21   : > { %s1012_s15 = scalar_lea.vmem (!%p966_p8), [#allocation2], %s542_s5 }
  0x22   : > { %854 = dma.done.wait (%p953_p4), %s173_s7, 256  }
  0x23   : > { %856 = vsyncadd (%p953_p4), %s173_s7, 4294967040 }
  0x24   : > { %858 = dma.done.wait (%p943_p1), [#allocation6], 2048  }
  0x25   : > { %860 = vsyncadd (%p943_p1), [#allocation6], 4294965248  ;;  %v611_v0 = vld [vmem:[#allocation5 + $0x70] sm:$0xf]  ;;  %v639_v1 = vld [vmem:[#allocation5 + $0x74] sm:$0xf0] }
  0x26   : > { %v638_v2 = vld [vmem:[#allocation5 + $0x74] sm:$0xf]  ;;  %v612_v3 = vor.u32 %v639_v1, %v611_v0  ;;  %v613_v4 = vld [vmem:[#allocation5 + $0x78] sm:$0xf0]  ;;  %v603_v5 = vld [vmem:[#allocation5 + $0x60] sm:$0xf] }
  0x27   : > { %v637_v6 = vld [vmem:[#allocation5 + $0x64] sm:$0xf0]  ;;  %v616_v7 = vor.u32 %v638_v2, %v613_v4  ;;  %v636_v8 = vld [vmem:[#allocation5 + $0x64] sm:$0xf]  ;;  %v605_v9 = vld [vmem:[#allocation5 + $0x68] sm:$0xf0] }
  0x28   : > { %317 = vmatpush.bf16.msra.mxu0 %v612_v3  ;;  %640 = vmatpush.bf16.msra.mxu2 %v612_v3  ;;  %v604_v10 = vor.u32 %v637_v6, %v603_v5  ;;  %v608_v11 = vor.u32 %v636_v8, %v605_v9  ;;  %v595_v12 = vld [vmem:[#allocation5 + $0x50] sm:$0xf]  ;;  %v635_v13 = vld [vmem:[#allocation5 + $0x54] sm:$0xf0]  ;;  %v634_v14 = vld [vmem:[#allocation5 + $0x54] sm:$0xf] }
  0x29   : > { %336 = vmatpush.bf16.msra.mxu1 %v616_v7  ;;  %648 = vmatpush.bf16.msra.mxu3 %v616_v7  ;;  %v597_v15 = vld [vmem:[#allocation5 + $0x58] sm:$0xf0]  ;;  %v596_v16 = vor.u32 %v635_v13, %v595_v12  ;;  %v587_v18 = vld [vmem:[#allocation5 + $0x40] sm:$0xf]  ;;  %v633_v19 = vld [vmem:[#allocation5 + $0x44] sm:$0xf0] }
  0x2a   : > { %v600_v17 = vor.u32 %v634_v14, %v597_v15  ;;  %v632_v20 = vld [vmem:[#allocation5 + $0x44] sm:$0xf]  ;;  %v589_v21 = vld [vmem:[#allocation5 + $0x48] sm:$0xf0]  ;;  %v588_v22 = vor.u32 %v633_v19, %v587_v18  ;;  %v579_v24 = vld [vmem:[#allocation5 + $0x30] sm:$0xf] }
  0x2b   : > { %v592_v23 = vor.u32 %v632_v20, %v589_v21  ;;  %v631_v25 = vld [vmem:[#allocation5 + $0x34] sm:$0xf0]  ;;  %v630_v26 = vld [vmem:[#allocation5 + $0x34] sm:$0xf]  ;;  %v581_v27 = vld [vmem:[#allocation5 + $0x38] sm:$0xf0] }
  0x2c   : > { %318 = vmatpush.bf16.msra.mxu0 %v604_v10  ;;  %641 = vmatpush.bf16.msra.mxu2 %v604_v10  ;;  %v580_v28 = vor.u32 %v631_v25, %v579_v24  ;;  %v584_v29 = vor.u32 %v630_v26, %v581_v27  ;;  %v571_v30 = vld [vmem:[#allocation5 + $0x20] sm:$0xf]  ;;  %v629_v31 = vld [vmem:[#allocation5 + $0x24] sm:$0xf0]  ;;  %v628_v32 = vld [vmem:[#allocation5 + $0x24] sm:$0xf] }
  0x2d   : > { %337 = vmatpush.bf16.msra.mxu1 %v608_v11  ;;  %649 = vmatpush.bf16.msra.mxu3 %v608_v11  ;;  %v573_v33 = vld [vmem:[#allocation5 + $0x28] sm:$0xf0]  ;;  %v572_v34 = vor.u32 %v629_v31, %v571_v30  ;;  %v563_v36 = vld [vmem:[#allocation5 + $0x10] sm:$0xf]  ;;  %v627_v37 = vld [vmem:[#allocation5 + $0x14] sm:$0xf0] }
  0x2e   : > { %v576_v35 = vor.u32 %v628_v32, %v573_v33  ;;  %v626_v38 = vld [vmem:[#allocation5 + $0x14] sm:$0xf]  ;;  %v565_v39 = vld [vmem:[#allocation5 + $0x18] sm:$0xf0]  ;;  %v564_v40 = vor.u32 %v627_v37, %v563_v36  ;;  %v555_v42 = vld [vmem:[#allocation5] sm:$0xf] }
  0x2f   : > { %v568_v41 = vor.u32 %v626_v38, %v565_v39  ;;  %v625_v43 = vld [vmem:[#allocation5 + $0x4] sm:$0xf0]  ;;  %v624_v44 = vld [vmem:[#allocation5 + $0x4] sm:$0xf]  ;;  %v557_v45 = vld [vmem:[#allocation5 + $0x8] sm:$0xf0] }
  0x30   : > { %319 = vmatpush.bf16.msra.mxu0 %v596_v16  ;;  %642 = vmatpush.bf16.msra.mxu2 %v596_v16  ;;  %v556_v46 = vor.u32 %v625_v43, %v555_v42  ;;  %v560_v47 = vor.u32 %v624_v44, %v557_v45  ;;  %v622_v48 = vld [vmem:[%s1012_s15] sm:$0xff]  ;;  %v623_v49 = vld [vmem:[%s1012_s15 + $0x8] sm:$0xff]  ;;  %s544_s17 = sshll.u32 %s1008_s30, 3  ;;  %s618_s19 = sshll.u32 %s879_s12, 3 }
  0x31   : > { %338 = vmatpush.bf16.msra.mxu1 %v600_v17  ;;  %650 = vmatpush.bf16.msra.mxu3 %v600_v17  ;;  %s437_s6 = scalar_lea.hbm %s1065_s2, %s618_s19  ;;  %s202_s16 = scalar_lea.vmem [#allocation7], %s544_s17 }
  0x32   : > { %s439_s21 = sshll.u32 %s202_s16, 4  ;;  %s441_s22 = sshll.u32 %s437_s6, 4  ;;  %s440_s21 = int_to_ptr.vmem [resolvable:$true] %s439_s21  ;;  %s442_s22 = int_to_ptr.hbm [resolvable:$true] %s441_s22 }
  0x33   : > { %s426_s12 = scalar_lea.sflag [#allocation4], %s1008_s30  ;;  %s815_s23 = sshra.s32 %s442_s22, 4  ;;  %s816_s23 = int_to_ptr.hbm [resolvable:$true] %s815_s23 }
  0x34   : > { %320 = vmatpush.bf16.msra.mxu0 %v588_v22  ;;  %643 = vmatpush.bf16.msra.mxu2 %v588_v22  ;;  %s817_s25 = scalar_lea.hbm %s816_s23, 8  ;;  %s821_s27 = scalar_lea.hbm %s1065_s2, 16 }
  0x35   : > { %339 = vmatpush.bf16.msra.mxu1 %v592_v23  ;;  %651 = vmatpush.bf16.msra.mxu3 %v592_v23  ;;  %p818_p1 = scmp.ne.s32.totalorder %s816_s23, %s817_s25  ;;  %p822_p10 = scmp.lt.s32.totalorder %s816_s23, %s1065_s2 }
  0x36   : > { %p823_p12 = scmp.lt.s32.totalorder %s821_s27, %s817_s25 }
  0x37   : > { %p819_p4 = pnand %p818_p1, %p988_p5 }
  0x38   : > { %321 = vmatpush.bf16.msra.mxu0 %v580_v28  ;;  %644 = vmatpush.bf16.msra.mxu2 %v580_v28  ;;  %p824_p13 = por %p823_p12, %p822_p10 }
  0x39   : > { %340 = vmatpush.bf16.msra.mxu1 %v584_v29  ;;  %652 = vmatpush.bf16.msra.mxu3 %v584_v29  ;;  %p820_p8 = pneg %p819_p4 }
  0x3b   : > { %p825_p0 = pnand %p824_p13, %p820_p8 }
  0x3c   : > { %322 = vmatpush.bf16.msra.mxu0 %v572_v34  ;;  %645 = vmatpush.bf16.msra.mxu2 %v572_v34 }
  0x3d   : > { %341 = vmatpush.bf16.msra.mxu1 %v576_v35  ;;  %653 = vmatpush.bf16.msra.mxu3 %v576_v35 }
  0x40   : > { %323 = vmatpush.bf16.msra.mxu0 %v564_v40  ;;  %646 = vmatpush.bf16.msra.mxu2 %v564_v40 }
  0x41   : > { %342 = vmatpush.bf16.msra.mxu1 %v568_v41  ;;  %654 = vmatpush.bf16.msra.mxu3 %v568_v41 }
  0x44   : > { %324 = vmatpush.bf16.msra.mxu0 %v556_v46  ;;  %647 = vmatpush.bf16.msra.mxu2 %v556_v46 }
  0x45   : > { %343 = vmatpush.bf16.msra.mxu1 %v560_v47  ;;  %655 = vmatpush.bf16.msra.mxu3 %v560_v47 }
  0x47   : > { %325 = vmatmul.bf16.vlgmr.msra.gmra.mxu0 %v622_v48  ;;  %330 = vmatmul.bf16.vlgmr.msra.gmra.mxu2 %v623_v49 }
  0x48   : > { %344 = vmatmul.bf16.vlgmr.msra.gmra.mxu1 %v622_v48  ;;  %349 = vmatmul.bf16.vlgmr.msra.gmra.mxu3 %v623_v49 }
  0xc4   : > { %v326_v50 = vpop.f32.mrf.mxu0 }
  0xc5   : > { %v355_v51 = vmul.f32 %v326_v50, %v326_v50  ;;  %v345_v52 = vpop.f32.mrf.mxu1 }
  0xc6   : > { %v357_v53 = vmul.f32 %v345_v52, %v345_v52 }
  0xc8   : > { %v359_v54 = vadd.f32 %v357_v53, %v355_v51 }
  0xca   : > { %733 = vrsqrt.f32 %v359_v54  ;;  %v331_v55 = vpop.f32.mrf.mxu2  ;;  %vm368_vm1 = vcmp.eq.f32.partialorder %v359_v54, inf  ;;  %v371_v35 = vand.u32 2147483648, %v359_v54  ;;  %vm370_vm4 = vcmp.eq.f32.partialorder %v359_v54, 0.0 }
  0xcb   : > { %v387_v56 = vmul.f32 %v331_v55, %v331_v55  ;;  %v350_v57 = vpop.f32.mrf.mxu3 }
  0xcc   : > { %v389_v58 = vmul.f32 %v350_v57, %v350_v57  ;;  %v328_v59 = vpop.f32.mrf.mxu0 }
  0xcd   : > { %v356_v60 = vmul.f32 %v328_v59, %v328_v59  ;;  %v347_v61 = vpop.f32.mrf.mxu1 }
  0xce   : > { %v391_v62 = vadd.f32 %v389_v58, %v387_v56  ;;  %v358_v63 = vmul.f32 %v347_v61, %v347_v61 }
  0xd0   : > { %v734_v0 = vpop.eup %733  ;;  %735 = vrsqrt.f32 %v391_v62  ;;  %v360_v1 = vadd.f32 %v358_v63, %v356_v60  ;;  %vm400_vm0 = vcmp.eq.f32.partialorder %v391_v62, inf  ;;  %v403_v32 = vand.u32 2147483648, %v391_v62 }
  0xd1   : > { %v362_v2 = vmul.f32 %v734_v0, %v359_v54  ;;  %vm402_vm2 = vcmp.eq.f32.partialorder %v391_v62, 0.0 }
  0xd2   : > { %737 = vrsqrt.f32 %v360_v1  ;;  %v333_v3 = vpop.f32.mrf.mxu2  ;;  %vm380_vm3 = vcmp.eq.f32.partialorder %v360_v1, inf  ;;  %v383_v40 = vand.u32 2147483648, %v360_v1  ;;  %vm382_vm5 = vcmp.eq.f32.partialorder %v360_v1, 0.0 }
  0xd3   : > { %v388_v4 = vmul.f32 %v333_v3, %v333_v3  ;;  %v352_v5 = vpop.f32.mrf.mxu3  ;;  %v363_v6 = vmul.f32 %v734_v0, %v362_v2 }
  0xd4   : > { %v390_v7 = vmul.f32 %v352_v5, %v352_v5 }
  0xd5   : > { %v364_v8 = vmul.f32 0.5, %v363_v6 }
  0xd6   : > { %v736_v9 = vpop.eup %735  ;;  %v392_v10 = vadd.f32 %v390_v7, %v388_v4 }
  0xd7   : > { %v394_v11 = vmul.f32 %v736_v9, %v391_v62  ;;  %v365_v14 = vsub.f32 1.5, %v364_v8 }
  0xd8   : > { %v738_v12 = vpop.eup %737  ;;  %739 = vrsqrt.f32 %v392_v10  ;;  %vm412_vm6 = vcmp.eq.f32.partialorder %v392_v10, inf  ;;  %v415_v44 = vand.u32 2147483648, %v392_v10  ;;  %vm414_vm7 = vcmp.eq.f32.partialorder %v392_v10, 0.0 }
  0xd9   : > { %v374_v13 = vmul.f32 %v738_v12, %v360_v1  ;;  %v395_v15 = vmul.f32 %v736_v9, %v394_v11  ;;  %v366_v18 = vmul.f32 %v734_v0, %v365_v14 }
  0xdb   : > { %v375_v16 = vmul.f32 %v738_v12, %v374_v13  ;;  %v396_v17 = vmul.f32 0.5, %v395_v15  ;;  %v367_v25 = vmul.f32 %v366_v18, %v359_v54 }
  0xdd   : > { %v376_v19 = vmul.f32 0.5, %v375_v16  ;;  %v397_v20 = vsub.f32 1.5, %v396_v17  ;;  %v369_v33 = vsel %vm368_vm1, %v359_v54, %v367_v25 }
  0xde   : > { %v740_v21 = vpop.eup %739  ;;  %v372_v39 = vsel %vm370_vm4, %v371_v35, %v369_v33 }
  0xdf   : > { %v406_v22 = vmul.f32 %v740_v21, %v392_v10  ;;  %v377_v23 = vsub.f32 1.5, %v376_v19  ;;  %v398_v24 = vmul.f32 %v736_v9, %v397_v20  ;;  %v385_v45 = vmax.f32 %v372_v39, 1e-07 }
  0xe1   : > { %v378_v26 = vmul.f32 %v738_v12, %v377_v23  ;;  %v399_v27 = vmul.f32 %v398_v24, %v391_v62  ;;  %v407_v28 = vmul.f32 %v740_v21, %v406_v22 }
  0xe3   : > { %v379_v29 = vmul.f32 %v378_v26, %v360_v1  ;;  %v401_v30 = vsel %vm400_vm0, %v391_v62, %v399_v27  ;;  %v408_v31 = vmul.f32 0.5, %v407_v28 }
  0xe4   : > { %v404_v36 = vsel %vm402_vm2, %v403_v32, %v401_v30 }
  0xe5   : > { %v409_v34 = vsub.f32 1.5, %v408_v31  ;;  %v381_v37 = vsel %vm380_vm3, %v360_v1, %v379_v29  ;;  %v417_v42 = vmax.f32 %v404_v36, 1e-07 }
  0xe6   : > { %v384_v43 = vsel %vm382_vm5, %v383_v40, %v381_v37 }
  0xe7   : > { %v410_v38 = vmul.f32 %v740_v21, %v409_v34  ;;  %v386_v48 = vmax.f32 %v384_v43, 1e-07  ;;  %v419_v50 = vsub.f32 %v385_v45, %v417_v42 }
  0xe9   : > { %v411_v41 = vmul.f32 %v410_v38, %v392_v10  ;;  %v421_v52 = vand.u32 2147483647, %v419_v50 }
  0xeb   : > { %v413_v46 = vsel %vm412_vm6, %v392_v10, %v411_v41 }
  0xec   : > { %v416_v47 = vsel %vm414_vm7, %v415_v44, %v413_v46 }
  0xed   : > { %v418_v49 = vmax.f32 %v416_v47, 1e-07 }
  0xef   : > { %v420_v51 = vsub.f32 %v386_v48, %v418_v49 }
  0xf1   : > { %v422_v53 = vand.u32 2147483647, %v420_v51 }
  0xf3   : > { %v423_v54 = vadd.f32 %v422_v53, %v421_v52 }
  0xf5   : > { %424 = vst [vmem:[%s202_s16] sm:$0xff] %v423_v54 }
  0xf6   : > { %828 = shalt.err (!%p825_p0)
}
  0xf7   : > { %662 = dma.vmem_to_hbm [thread:$0]  (%p988_p5), %s440_s21, 128, %s442_s22, %s426_s12  }
  0xf8 PF: > { %s453_s30 = sand.u32 1, %s867_s9   ;;  %p673_p3 = pnand %p537_p11, %p958_p6 }
  0xf9   : > { %s454_s7 = scalar_lea.sflag [#allocation4], %s453_s30 }
  0xfa   : > { %p674_p7 = pneg %p673_p3 }
  0xfc   : > { %862 = dma.done.wait (%p674_p7), %s454_s7, 128  }
  0xfd   : > { %864 = vsyncadd (%p674_p7), %s454_s7, 4294967168  ;;  %s19_s14 = sadd.s32 1, %s887_s14   ;;  %s1073_s9 = smov %s871_s10 }
  0xfe   : > { %p16_p9 = scmp.ge.s32.totalorder %s19_s14, 4   ;;  %s1074_s10 = smov %s875_s11 }
  0xff   : > { %s1075_s11 = smov %s997_s8  ;;  %s1076_s12 = smov %s883_s13 }
 0x100   : > { %s1077_s13 = smov %s1079_s29  ;;  %18 = sbr.rel (!%p16_p9) target bundleno = 7 (0x7), region = 78 }
 0x105   :  { %460 = vsyncpa [#allocation3], 1 }
 0x106   :  { %462 = vsyncpa [#allocation3 + $0x1], 1 }
 0x107   :  { %463 = vsyncpa [#allocation6], 1 }
 0x108   :  { %464 = vsyncpa [#allocation4], 1 }
 0x109   :  { %466 = vsyncpa [#allocation4 + $0x1], 1 }

// kernel: tpu_custom_call.1
= control target key start
LH: loop header
LB: loop body
LE: loop exit
PB: predicated region body
PF: predicated region fallthrough
CT: control target
= control target key end

     0   :  { %7 = vsyncpa [#allocation3], 0  ;;  %s1063_s0 = inlined_call_operand.hbm [shape: bf16[64,128], index: 0, kind: input, shape index: {}]   ;;  %s1064_s1 = inlined_call_operand.hbm [shape: bf16[128,256], index: 1, kind: input, shape index: {}]   ;;  %s1065_s2 = inlined_call_operand.hbm [shape: f32[16,128], index: 2, kind: output, shape index: {}]  }
   0x1   :  { %9 = vsyncpa [#allocation3 + $0x1], 0 }
   0x2   :  { %10 = vsyncpa [#allocation6], 0 }
   0x3   :  { %11 = vsyncpa [#allocation4], 0 }
   0x4   :  { %13 = vsyncpa [#allocation4 + $0x1], 0  ;;  %s909_s9 = smov 0   ;;  %s911_s10 = smov 0  }
   0x5   :  { %s913_s11 = smov 0   ;;  %s915_s12 = smov 0  }
   0x6   :  { %s917_s13 = smov 0   ;;  %s919_s14 = smov 0  }
   0x7 LB: > { %s533_s15 = sadd.s32 4294967295, %s887_s14   ;;  %s534_s16 = sadd.s32 4294967294, %s887_s14   ;;  %s887_s14 = sphi %s919_s14, %s19_s14   ;;  %s883_s13 = sphi %s917_s13, %s1077_s13   ;;  %s879_s12 = sphi %s915_s12, %s1076_s12   ;;  %s875_s11 = sphi %s913_s11, %s1075_s11   ;;  %s871_s10 = sphi %s911_s10, %s1074_s10   ;;  %s867_s9 = sphi %s909_s9, %s1073_s9  }
   0x8   : > { %p51_p0 = scmp.ne.s32.totalorder %s871_s10, %s867_s9  ;;  %p943_p1 = scmp.eq.s32.totalorder %s533_s15, 0 }
   0x9   : > { %p947_p2 = scmp.eq.s32.totalorder %s533_s15, 1  ;;  %p109_p3 = scmp.eq.s32.totalorder %s534_s16, 1 }
   0xa   : > { %p953_p4 = por %p943_p1, %p51_p0  ;;  %p535_p5 = scmp.ge.s32.totalorder %s887_s14, 1 }
   0xb   : > { %p958_p6 = por %p109_p3, %p51_p0  ;;  %p116_p7 = scmp.lt.s32.totalorder %s887_s14, 3 }
   0xc   : > { %s130_s23 = sshll.u32 %s1064_s1, 4  ;;  %s889_s25 = smov [#allocation5]   ;;  %s131_s23 = int_to_ptr.hbm [resolvable:$true] %s130_s23 }
   0xd   : > { %p966_p8 = pnand %p535_p5, %p116_p7  ;;  %s132_s26 = sshll.u32 %s889_s25, 4  ;;  %s133_s26 = int_to_ptr.vmem [resolvable:$true] %s132_s26 }
   0xe   : > { %p537_p11 = scmp.ge.s32.totalorder %s887_s14, 2  ;;  %s890_s27 = smov 128  }
   0xf   : > { %p664_p9 = pneg %p966_p8  ;;  %s891_s28 = smov 8  }
  0x10   : > { %s31_s29 = sadd.s32 1, %s883_s13  ;;  %s38_s30 = sadd.s32 1, %s875_s11 }
  0x11   : > { %p665_p10 = pnand %p664_p9, %p943_p1  ;;  %p33_p12 = scmp.ge.s32.totalorder %s31_s29, 2 }
  0x12   : > { %p45_p13 = scmp.ne.s32.totalorder %s875_s11, %s871_s10  ;;  %p46_p0 = scmp.eq.s32.totalorder %s887_s14, 0 }
  0x13   : > { %667 = dma.hbm_to_vmem [thread:$0]  (!%p665_p10), %s131_s23, 2048, %s133_s26, [#allocation6], %s890_s27, %s890_s27, %s891_s28  }
  0x14   : > { %s1079_s29 = smov (%p33_p12, %s31_s29), 0  ;;  %p982_p3 = por %p46_p0, %p45_p13 }
  0x15   : > { %p988_p5 = por %p947_p2, %p45_p13  ;;  %s35_s5 = ssub.s32 %s883_s13, %s1079_s29 }
  0x16   : > { %p677_p7 = scmp.lt.s32.totalorder %s887_s14, 2  ;;  %p36_p9 = scmp.eq.s32.totalorder %s35_s5, 0 }
  0x17   : > { %s146_s6 = sand.u32 1, %s875_s11   ;;  %s621_s15 = sshll.u32 %s883_s13, 4 }
  0x18   : > { %s538_s7 = sshll.u32 %s146_s6, 4  ;;  %s155_s22 = scalar_lea.hbm %s1063_s0, %s621_s15 }
  0x19   : > { %s997_s8 = scalar_select %p36_p9, %s875_s11, %s38_s30  }
  0x1a   : > { %s150_s23 = scalar_lea.vmem [#allocation2], %s538_s7  ;;  %s156_s18 = sshll.u32 %s155_s22, 4  ;;  %s157_s18 = int_to_ptr.hbm [resolvable:$true] %s156_s18 }
  0x1b   : > { %s158_s25 = sshll.u32 %s150_s23, 4  ;;  %p669_p2 = pnand %p677_p7, %p982_p3  ;;  %s159_s25 = int_to_ptr.vmem [resolvable:$true] %s158_s25 }
  0x1c   : > { %s147_s26 = scalar_lea.sflag [#allocation3], %s146_s6  ;;  %s892_s27 = smov 64  }
  0x1d   : > { %s893_s28 = smov 4   ;;  %170 = sbr.rel (%p966_p8) target bundleno = 248 (0xf8), region = 28 }
  0x1e   : > { %671 = dma.hbm_to_vmem [thread:$0]  (!%p669_p2), %s157_s18, 256, %s159_s25, %s147_s26, %s892_s27, %s892_s27, %s893_s28  }
  0x1f   : > { %s1008_s30 = sand.u32 (!%p966_p8), 1, %s871_s10  }
  0x20   : > { %s542_s5 = sshll.u32 (!%p966_p8), %s1008_s30, 4  ;;  %s173_s7 = scalar_lea.sflag (!%p966_p8), [#allocation3], %s1008_s30 }
  0x21   : > { %s1012_s15 = scalar_lea.vmem (!%p966_p8), [#allocation2], %s542_s5 }
  0x22   : > { %854 = dma.done.wait (%p953_p4), %s173_s7, 256  }
  0x23   : > { %856 = vsyncadd (%p953_p4), %s173_s7, 4294967040 }
  0x24   : > { %858 = dma.done.wait (%p943_p1), [#allocation6], 2048  }
  0x25   : > { %860 = vsyncadd (%p943_p1), [#allocation6], 4294965248  ;;  %v611_v0 = vld [vmem:[#allocation5 + $0x70] sm:$0xf]  ;;  %v639_v1 = vld [vmem:[#allocation5 + $0x74] sm:$0xf0] }
  0x26   : > { %v638_v2 = vld [vmem:[#allocation5 + $0x74] sm:$0xf]  ;;  %v612_v3 = vor.u32 %v639_v1, %v611_v0  ;;  %v613_v4 = vld [vmem:[#allocation5 + $0x78] sm:$0xf0]  ;;  %v603_v5 = vld [vmem:[#allocation5 + $0x60] sm:$0xf] }
  0x27   : > { %v637_v6 = vld [vmem:[#allocation5 + $0x64] sm:$0xf0]  ;;  %v616_v7 = vor.u32 %v638_v2, %v613_v4  ;;  %v636_v8 = vld [vmem:[#allocation5 + $0x64] sm:$0xf]  ;;  %v605_v9 = vld [vmem:[#allocation5 + $0x68] sm:$0xf0] }
  0x28   : > { %317 = vmatpush.bf16.msra.mxu0 %v612_v3  ;;  %640 = vmatpush.bf16.msra.mxu2 %v612_v3  ;;  %v604_v10 = vor.u32 %v637_v6, %v603_v5  ;;  %v608_v11 = vor.u32 %v636_v8, %v605_v9  ;;  %v595_v12 = vld [vmem:[#allocation5 + $0x50] sm:$0xf]  ;;  %v635_v13 = vld [vmem:[#allocation5 + $0x54] sm:$0xf0]  ;;  %v634_v14 = vld [vmem:[#allocation5 + $0x54] sm:$0xf] }
  0x29   : > { %336 = vmatpush.bf16.msra.mxu1 %v616_v7  ;;  %648 = vmatpush.bf16.msra.mxu3 %v616_v7  ;;  %v597_v15 = vld [vmem:[#allocation5 + $0x58] sm:$0xf0]  ;;  %v596_v16 = vor.u32 %v635_v13, %v595_v12  ;;  %v587_v18 = vld [vmem:[#allocation5 + $0x40] sm:$0xf]  ;;  %v633_v19 = vld [vmem:[#allocation5 + $0x44] sm:$0xf0] }
  0x2a   : > { %v600_v17 = vor.u32 %v634_v14, %v597_v15  ;;  %v632_v20 = vld [vmem:[#allocation5 + $0x44] sm:$0xf]  ;;  %v589_v21 = vld [vmem:[#allocation5 + $0x48] sm:$0xf0]  ;;  %v588_v22 = vor.u32 %v633_v19, %v587_v18  ;;  %v579_v24 = vld [vmem:[#allocation5 + $0x30] sm:$0xf] }
  0x2b   : > { %v592_v23 = vor.u32 %v632_v20, %v589_v21  ;;  %v631_v25 = vld [vmem:[#allocation5 + $0x34] sm:$0xf0]  ;;  %v630_v26 = vld [vmem:[#allocation5 + $0x34] sm:$0xf]  ;;  %v581_v27 = vld [vmem:[#allocation5 + $0x38] sm:$0xf0] }
  0x2c   : > { %318 = vmatpush.bf16.msra.mxu0 %v604_v10  ;;  %641 = vmatpush.bf16.msra.mxu2 %v604_v10  ;;  %v580_v28 = vor.u32 %v631_v25, %v579_v24  ;;  %v584_v29 = vor.u32 %v630_v26, %v581_v27  ;;  %v571_v30 = vld [vmem:[#allocation5 + $0x20] sm:$0xf]  ;;  %v629_v31 = vld [vmem:[#allocation5 + $0x24] sm:$0xf0]  ;;  %v628_v32 = vld [vmem:[#allocation5 + $0x24] sm:$0xf] }
  0x2d   : > { %337 = vmatpush.bf16.msra.mxu1 %v608_v11  ;;  %649 = vmatpush.bf16.msra.mxu3 %v608_v11  ;;  %v573_v33 = vld [vmem:[#allocation5 + $0x28] sm:$0xf0]  ;;  %v572_v34 = vor.u32 %v629_v31, %v571_v30  ;;  %v563_v36 = vld [vmem:[#allocation5 + $0x10] sm:$0xf]  ;;  %v627_v37 = vld [vmem:[#allocation5 + $0x14] sm:$0xf0] }
  0x2e   : > { %v576_v35 = vor.u32 %v628_v32, %v573_v33  ;;  %v626_v38 = vld [vmem:[#allocation5 + $0x14] sm:$0xf]  ;;  %v565_v39 = vld [vmem:[#allocation5 + $0x18] sm:$0xf0]  ;;  %v564_v40 = vor.u32 %v627_v37, %v563_v36  ;;  %v555_v42 = vld [vmem:[#allocation5] sm:$0xf] }
  0x2f   : > { %v568_v41 = vor.u32 %v626_v38, %v565_v39  ;;  %v625_v43 = vld [vmem:[#allocation5 + $0x4] sm:$0xf0]  ;;  %v624_v44 = vld [vmem:[#allocation5 + $0x4] sm:$0xf]  ;;  %v557_v45 = vld [vmem:[#allocation5 + $0x8] sm:$0xf0] }
  0x30   : > { %319 = vmatpush.bf16.msra.mxu0 %v596_v16  ;;  %642 = vmatpush.bf16.msra.mxu2 %v596_v16  ;;  %v556_v46 = vor.u32 %v625_v43, %v555_v42  ;;  %v560_v47 = vor.u32 %v624_v44, %v557_v45  ;;  %v622_v48 = vld [vmem:[%s1012_s15] sm:$0xff]  ;;  %v623_v49 = vld [vmem:[%s1012_s15 + $0x8] sm:$0xff]  ;;  %s544_s17 = sshll.u32 %s1008_s30, 3  ;;  %s618_s19 = sshll.u32 %s879_s12, 3 }
  0x31   : > { %338 = vmatpush.bf16.msra.mxu1 %v600_v17  ;;  %650 = vmatpush.bf16.msra.mxu3 %v600_v17  ;;  %s437_s6 = scalar_lea.hbm %s1065_s2, %s618_s19  ;;  %s202_s16 = scalar_lea.vmem [#allocation7], %s544_s17 }
  0x32   : > { %s439_s21 = sshll.u32 %s202_s16, 4  ;;  %s441_s22 = sshll.u32 %s437_s6, 4  ;;  %s440_s21 = int_to_ptr.vmem [resolvable:$true] %s439_s21  ;;  %s442_s22 = int_to_ptr.hbm [resolvable:$true] %s441_s22 }
  0x33   : > { %s426_s12 = scalar_lea.sflag [#allocation4], %s1008_s30  ;;  %s815_s23 = sshra.s32 %s442_s22, 4  ;;  %s816_s23 = int_to_ptr.hbm [resolvable:$true] %s815_s23 }
  0x34   : > { %320 = vmatpush.bf16.msra.mxu0 %v588_v22  ;;  %643 = vmatpush.bf16.msra.mxu2 %v588_v22  ;;  %s817_s25 = scalar_lea.hbm %s816_s23, 8  ;;  %s821_s27 = scalar_lea.hbm %s1065_s2, 16 }
  0x35   : > { %339 = vmatpush.bf16.msra.mxu1 %v592_v23  ;;  %651 = vmatpush.bf16.msra.mxu3 %v592_v23  ;;  %p818_p1 = scmp.ne.s32.totalorder %s816_s23, %s817_s25  ;;  %p822_p10 = scmp.lt.s32.totalorder %s816_s23, %s1065_s2 }
  0x36   : > { %p823_p12 = scmp.lt.s32.totalorder %s821_s27, %s817_s25 }
  0x37   : > { %p819_p4 = pnand %p818_p1, %p988_p5 }
  0x38   : > { %321 = vmatpush.bf16.msra.mxu0 %v580_v28  ;;  %644 = vmatpush.bf16.msra.mxu2 %v580_v28  ;;  %p824_p13 = por %p823_p12, %p822_p10 }
  0x39   : > { %340 = vmatpush.bf16.msra.mxu1 %v584_v29  ;;  %652 = vmatpush.bf16.msra.mxu3 %v584_v29  ;;  %p820_p8 = pneg %p819_p4 }
  0x3b   : > { %p825_p0 = pnand %p824_p13, %p820_p8 }
  0x3c   : > { %322 = vmatpush.bf16.msra.mxu0 %v572_v34  ;;  %645 = vmatpush.bf16.msra.mxu2 %v572_v34 }
  0x3d   : > { %341 = vmatpush.bf16.msra.mxu1 %v576_v35  ;;  %653 = vmatpush.bf16.msra.mxu3 %v576_v35 }
  0x40   : > { %323 = vmatpush.bf16.msra.mxu0 %v564_v40  ;;  %646 = vmatpush.bf16.msra.mxu2 %v564_v40 }
  0x41   : > { %342 = vmatpush.bf16.msra.mxu1 %v568_v41  ;;  %654 = vmatpush.bf16.msra.mxu3 %v568_v41 }
  0x44   : > { %324 = vmatpush.bf16.msra.mxu0 %v556_v46  ;;  %647 = vmatpush.bf16.msra.mxu2 %v556_v46 }
  0x45   : > { %343 = vmatpush.bf16.msra.mxu1 %v560_v47  ;;  %655 = vmatpush.bf16.msra.mxu3 %v560_v47 }
  0x47   : > { %325 = vmatmul.bf16.vlgmr.msra.gmra.mxu0 %v622_v48  ;;  %330 = vmatmul.bf16.vlgmr.msra.gmra.mxu2 %v623_v49 }
  0x48   : > { %344 = vmatmul.bf16.vlgmr.msra.gmra.mxu1 %v622_v48  ;;  %349 = vmatmul.bf16.vlgmr.msra.gmra.mxu3 %v623_v49 }
  0xc4   : > { %v326_v50 = vpop.f32.mrf.mxu0 }
  0xc5   : > { %v355_v51 = vmul.f32 %v326_v50, %v326_v50  ;;  %v345_v52 = vpop.f32.mrf.mxu1 }
  0xc6   : > { %v357_v53 = vmul.f32 %v345_v52, %v345_v52 }
  0xc8   : > { %v359_v54 = vadd.f32 %v357_v53, %v355_v51 }
  0xca   : > { %733 = vrsqrt.f32 %v359_v54  ;;  %v331_v55 = vpop.f32.mrf.mxu2  ;;  %vm368_vm1 = vcmp.eq.f32.partialorder %v359_v54, inf  ;;  %v371_v35 = vand.u32 2147483648, %v359_v54  ;;  %vm370_vm4 = vcmp.eq.f32.partialorder %v359_v54, 0.0 }
  0xcb   : > { %v387_v56 = vmul.f32 %v331_v55, %v331_v55  ;;  %v350_v57 = vpop.f32.mrf.mxu3 }
  0xcc   : > { %v389_v58 = vmul.f32 %v350_v57, %v350_v57  ;;  %v328_v59 = vpop.f32.mrf.mxu0 }
  0xcd   : > { %v356_v60 = vmul.f32 %v328_v59, %v328_v59  ;;  %v347_v61 = vpop.f32.mrf.mxu1 }
  0xce   : > { %v391_v62 = vadd.f32 %v389_v58, %v387_v56  ;;  %v358_v63 = vmul.f32 %v347_v61, %v347_v61 }
  0xd0   : > { %v734_v0 = vpop.eup %733  ;;  %735 = vrsqrt.f32 %v391_v62  ;;  %v360_v1 = vadd.f32 %v358_v63, %v356_v60  ;;  %vm400_vm0 = vcmp.eq.f32.partialorder %v391_v62, inf  ;;  %v403_v32 = vand.u32 2147483648, %v391_v62 }
  0xd1   : > { %v362_v2 = vmul.f32 %v734_v0, %v359_v54  ;;  %vm402_vm2 = vcmp.eq.f32.partialorder %v391_v62, 0.0 }
  0xd2   : > { %737 = vrsqrt.f32 %v360_v1  ;;  %v333_v3 = vpop.f32.mrf.mxu2  ;;  %vm380_vm3 = vcmp.eq.f32.partialorder %v360_v1, inf  ;;  %v383_v40 = vand.u32 2147483648, %v360_v1  ;;  %vm382_vm5 = vcmp.eq.f32.partialorder %v360_v1, 0.0 }
  0xd3   : > { %v388_v4 = vmul.f32 %v333_v3, %v333_v3  ;;  %v352_v5 = vpop.f32.mrf.mxu3  ;;  %v363_v6 = vmul.f32 %v734_v0, %v362_v2 }
  0xd4   : > { %v390_v7 = vmul.f32 %v352_v5, %v352_v5 }
  0xd5   : > { %v364_v8 = vmul.f32 0.5, %v363_v6 }
  0xd6   : > { %v736_v9 = vpop.eup %735  ;;  %v392_v10 = vadd.f32 %v390_v7, %v388_v4 }
  0xd7   : > { %v394_v11 = vmul.f32 %v736_v9, %v391_v62  ;;  %v365_v14 = vsub.f32 1.5, %v364_v8 }
  0xd8   : > { %v738_v12 = vpop.eup %737  ;;  %739 = vrsqrt.f32 %v392_v10  ;;  %vm412_vm6 = vcmp.eq.f32.partialorder %v392_v10, inf  ;;  %v415_v44 = vand.u32 2147483648, %v392_v10  ;;  %vm414_vm7 = vcmp.eq.f32.partialorder %v392_v10, 0.0 }
  0xd9   : > { %v374_v13 = vmul.f32 %v738_v12, %v360_v1  ;;  %v395_v15 = vmul.f32 %v736_v9, %v394_v11  ;;  %v366_v18 = vmul.f32 %v734_v0, %v365_v14 }
  0xdb   : > { %v375_v16 = vmul.f32 %v738_v12, %v374_v13  ;;  %v396_v17 = vmul.f32 0.5, %v395_v15  ;;  %v367_v25 = vmul.f32 %v366_v18, %v359_v54 }
  0xdd   : > { %v376_v19 = vmul.f32 0.5, %v375_v16  ;;  %v397_v20 = vsub.f32 1.5, %v396_v17  ;;  %v369_v33 = vsel %vm368_vm1, %v359_v54, %v367_v25 }
  0xde   : > { %v740_v21 = vpop.eup %739  ;;  %v372_v39 = vsel %vm370_vm4, %v371_v35, %v369_v33 }
  0xdf   : > { %v406_v22 = vmul.f32 %v740_v21, %v392_v10  ;;  %v377_v23 = vsub.f32 1.5, %v376_v19  ;;  %v398_v24 = vmul.f32 %v736_v9, %v397_v20  ;;  %v385_v45 = vmax.f32 %v372_v39, 1e-07 }
  0xe1   : > { %v378_v26 = vmul.f32 %v738_v12, %v377_v23  ;;  %v399_v27 = vmul.f32 %v398_v24, %v391_v62  ;;  %v407_v28 = vmul.f32 %v740_v21, %v406_v22 }
  0xe3   : > { %v379_v29 = vmul.f32 %v378_v26, %v360_v1  ;;  %v401_v30 = vsel %vm400_vm0, %v391_v62, %v399_v27  ;;  %v408_v31 = vmul.f32 0.5, %v407_v28 }
  0xe4   : > { %v404_v36 = vsel %vm402_vm2, %v403_v32, %v401_v30 }
  0xe5   : > { %v409_v34 = vsub.f32 1.5, %v408_v31  ;;  %v381_v37 = vsel %vm380_vm3, %v360_v1, %v379_v29  ;;  %v417_v42 = vmax.f32 %v404_v36, 1e-07 }
  0xe6   : > { %v384_v43 = vsel %vm382_vm5, %v383_v40, %v381_v37 }
  0xe7   : > { %v410_v38 = vmul.f32 %v740_v21, %v409_v34  ;;  %v386_v48 = vmax.f32 %v384_v43, 1e-07  ;;  %v419_v50 = vsub.f32 %v385_v45, %v417_v42 }
  0xe9   : > { %v411_v41 = vmul.f32 %v410_v38, %v392_v10  ;;  %v421_v52 = vand.u32 2147483647, %v419_v50 }
  0xeb   : > { %v413_v46 = vsel %vm412_vm6, %v392_v10, %v411_v41 }
  0xec   : > { %v416_v47 = vsel %vm414_vm7, %v415_v44, %v413_v46 }
  0xed   : > { %v418_v49 = vmax.f32 %v416_v47, 1e-07 }
  0xef   : > { %v420_v51 = vsub.f32 %v386_v48, %v418_v49 }
  0xf1   : > { %v422_v53 = vand.u32 2147483647, %v420_v51 }
  0xf3   : > { %v423_v54 = vadd.f32 %v422_v53, %v421_v52 }
  0xf5   : > { %424 = vst [vmem:[%s202_s16] sm:$0xff] %v423_v54 }
  0xf6   : > { %828 = shalt.err (!%p825_p0)
}
  0xf7   : > { %662 = dma.vmem_to_hbm [thread:$0]  (%p988_p5), %s440_s21, 128, %s442_s22, %s426_s12  }
  0xf8 PF: > { %s453_s30 = sand.u32 1, %s867_s9   ;;  %p673_p3 = pnand %p537_p11, %p958_p6 }
  0xf9   : > { %s454_s7 = scalar_lea.sflag [#allocation4], %s453_s30 }
  0xfa   : > { %p674_p7 = pneg %p673_p3 }
  0xfc   : > { %862 = dma.done.wait (%p674_p7), %s454_s7, 128  }
  0xfd   : > { %864 = vsyncadd (%p674_p7), %s454_s7, 4294967168  ;;  %s19_s14 = sadd.s32 1, %s887_s14   ;;  %s1073_s9 = smov %s871_s10 }
  0xfe   : > { %p16_p9 = scmp.ge.s32.totalorder %s19_s14, 4   ;;  %s1074_s10 = smov %s875_s11 }
  0xff   : > { %s1075_s11 = smov %s997_s8  ;;  %s1076_s12 = smov %s883_s13 }
 0x100   : > { %s1077_s13 = smov %s1079_s29  ;;  %18 = sbr.rel (!%p16_p9) target bundleno = 7 (0x7), region = 78 }
 0x105   :  { %460 = vsyncpa [#allocation3], 1 }
 0x106   :  { %462 = vsyncpa [#allocation3 + $0x1], 1 }
 0x107   :  { %463 = vsyncpa [#allocation6], 1 }
 0x108   :  { %464 = vsyncpa [#allocation4], 1 }
 0x109   :  { %466 = vsyncpa [#allocation4 + $0x1], 1 }

</bundles_post_ra>
